<compile_context>
chip_gen: v7x
topology: tpu7x:2x2x1
jax: 0.10.0
libtpu: 0.0.40
codegen_flags: <defaults>
</compile_context>

<pallas_src>
import math

import jax
import jax.numpy as jnp
from jax.experimental import pallas as pl
from jax.experimental.pallas import tpu as pltpu


def critic_kernel(s_ref, a_ref, w1_ref, w2_ref, pack_ref, b3_ref, o_ref):
    ds = s_ref.shape[1]

    # fc1: split-K over the (states | actions) concat. w1 rows [0, ds) pair with
    # states, rows [ds, ds+da) with actions — identical math to concat + 1 dot.
    h = jnp.dot(s_ref[...], w1_ref[:ds, :], preferred_element_type=jnp.float32)
    h = h + jnp.dot(a_ref[...], w1_ref[ds:, :],
                    preferred_element_type=jnp.float32)
    h = h + pack_ref[0:1, :]                          # + b1
    h = jnp.maximum(h, 0.0).astype(jnp.bfloat16)      # ReLU, bf16 for MXU fc2

    # fc2: the dominant 512x512 bf16 matmul, f32 accumulation.
    h = jnp.dot(h, w2_ref[...], preferred_element_type=jnp.float32)
    h = h + pack_ref[1:2, :]                          # + b2
    h = jnp.maximum(h, 0.0)                           # ReLU (f32)

    # out (N=1): VPU multiply + lane reduction against the packed w3 row instead
    # of paying a full MXU push/drain for a single output column.
    q = jnp.sum(h * pack_ref[2:3, :], axis=-1, keepdims=True) + b3_ref[0, 0]
    o_ref[...] = q.astype(o_ref.dtype)


def critic_forward(states, actions, params, *, block_b=256):
    w1, w2, pack, b3 = params
    B, ds = states.shape
    da = actions.shape[1]
    dim_in, h1 = w1.shape
    h2 = w2.shape[1]
    assert dim_in == ds + da

    # Batch tiling: shard large batches across TensorCores; small / ragged
    # batches run as one VMEM-resident tile (the kernel is launch/DMA bound
    # there and splitting is pure overhead).
    if B >= block_b and B % block_b == 0:
        tb = block_b
    else:
        tb = B
    nb = B // tb

    return pl.pallas_call(
        critic_kernel,
        out_shape=jax.ShapeDtypeStruct((B, 1), jnp.float32),
        grid_spec=pltpu.PrefetchScalarGridSpec(
            num_scalar_prefetch=0,
            grid=(nb,),
            in_specs=[
                pl.BlockSpec((tb, ds), lambda i: (i, 0)),
                pl.BlockSpec((tb, da), lambda i: (i, 0)),
                # Constant index_maps: weights/biases stay VMEM-resident across
                # batch tiles (no per-tile re-DMA).
                pl.BlockSpec((dim_in, h1), lambda i: (0, 0)),
                pl.BlockSpec((h1, h2), lambda i: (0, 0)),
                pl.BlockSpec((3, h2), lambda i: (0, 0)),
                pl.BlockSpec(memory_space=pltpu.MemorySpace.SMEM),  # b3 scalar
            ],
            out_specs=pl.BlockSpec((tb, 1), lambda i: (i, 0)),
        ),
        compiler_params=pltpu.CompilerParams(
            dimension_semantics=("parallel",),
            vmem_limit_bytes=8 << 20,
        ),
    )(states, actions, w1, w2, pack, b3)


def fanin_init(key, torch_weight_shape):
    # Canonical DDPG/SAC fanin_init applied to PyTorch's (out, in) weight:
    # bound = 1/sqrt(size(0)) = 1/sqrt(out_features). Returned in (in, out)
    # layout for the JAX-side matmul.
    out_f, in_f = torch_weight_shape
    bound = 1.0 / math.sqrt(out_f)
    return jax.random.uniform(key, (in_f, out_f), jnp.float32, -bound, bound)


def make_params(key, dim_state, dim_action, h1=512, h2=512, init_w=3e-3):
    """f32 master parameters mirroring the PyTorch Critic's initialization."""
    ks = jax.random.split(key, 6)
    dim_in = dim_state + dim_action
    w1 = fanin_init(ks[0], (h1, dim_in))
    b1 = jax.random.uniform(ks[1], (h1,), jnp.float32,
                            -1.0 / math.sqrt(dim_in), 1.0 / math.sqrt(dim_in))
    w2 = fanin_init(ks[2], (h2, h1))
    b2 = jax.random.uniform(ks[3], (h2,), jnp.float32,
                            -1.0 / math.sqrt(h1), 1.0 / math.sqrt(h1))
    w3 = jax.random.uniform(ks[4], (h2,), jnp.float32, -init_w, init_w)
    b3 = jax.random.uniform(ks[5], (1, 1), jnp.float32,
                            -1.0 / math.sqrt(h2), 1.0 / math.sqrt(h2))
    return (w1, b1, w2, b2, w3, b3)


def pack_params(masters):
    """Kernel layout: f32 w1, bf16 w2, one packed (3, h2) f32 [b1; b2; w3_row],
    and a (1,1) f32 b3 for SMEM."""
    w1, b1, w2, b2, w3, b3 = masters
    assert b1.shape == b2.shape == w3.shape, "pack layout needs h1 == h2"
    pack = jnp.stack([b1, b2, w3], axis=0).astype(jnp.float32)
    return (w1.astype(jnp.float32),
            w2.astype(jnp.bfloat16),
            pack,
            jnp.reshape(b3, (1, 1)).astype(jnp.float32))


def reference_mixed(states, actions, masters):
    """Pure-JAX reference mirroring the kernel's mixed precision."""
    w1, b1, w2, b2, w3, b3 = masters
    x = jnp.concatenate([states, actions], axis=1)
    h = x @ w1 + b1                                     # fc1 in f32
    h = jax.nn.relu(h).astype(jnp.bfloat16)
    h = jnp.dot(h, w2.astype(jnp.bfloat16),
                preferred_element_type=jnp.float32) + b2
    h = jax.nn.relu(h)
    return jnp.sum(h * w3, axis=-1, keepdims=True) + b3[0, 0]


def reference_f32(states, actions, masters):
    """True f32 PyTorch-Critic semantics."""
    w1, b1, w2, b2, w3, b3 = masters
    x = jnp.concatenate([states, actions], axis=1)
    h = jax.nn.relu(x @ w1 + b1)
    h = jax.nn.relu(h @ w2 + b2)
    return h @ w3[:, None] + b3[0, 0]


if __name__ == "__main__":
    dim_state, dim_action, batch = 24, 8, 8

    key = jax.random.PRNGKey(0)
    k_s, k_a, k_p = jax.random.split(key, 3)
    states = jax.random.normal(k_s, (batch, dim_state), jnp.float32)
    actions = jax.random.normal(k_a, (batch, dim_action), jnp.float32)

    masters = make_params(k_p, dim_state, dim_action)
    params = pack_params(masters)

    q = jax.jit(critic_forward)(states, actions, params)
    q = jax.block_until_ready(q)

    q_mixed = reference_mixed(states, actions, masters)
    q_f32 = reference_f32(states, actions, masters)

    assert q.shape == (batch, 1)
    # Tight check against the precision-matched reference.
    assert jnp.allclose(q, q_mixed, atol=2e-3, rtol=2e-2), \
        "mismatch vs mixed-precision JAX reference"
    # Loose check against the true f32 model (bf16 w2/h quantization is a
    # deliberate precision trade-off).
    assert jnp.allclose(q, q_f32, atol=1e-2, rtol=1e-1), \
        "mismatch vs f32 JAX reference"

    print("KERNEL_OK")
</pallas_src>

<mosaic_0001>
module attributes {stable_mosaic.version = 11 : i64} {
  func.func @critic_kernel(%arg0: i32, %arg1: memref<8x24xf32, #tpu.memory_space<vmem>>, %arg2: memref<8x8xf32, #tpu.memory_space<vmem>>, %arg3: memref<32x512xf32, #tpu.memory_space<vmem>>, %arg4: memref<512x512xbf16, #tpu.memory_space<vmem>>, %arg5: memref<3x512xf32, #tpu.memory_space<vmem>>, %arg6: memref<1x1xf32, #tpu.memory_space<smem>>, %arg7: memref<8x1xf32, #tpu.memory_space<vmem>>) attributes {dimension_semantics = [#tpu.dimension_semantics<parallel>], iteration_bounds = array<i64: 1>, scalar_prefetch = 0 : i64, scratch_operands = 0 : i64, tpu.core_type = #tpu.core_type<tc>, window_params = [{transform_indices = @transform_0, window_bounds = array<i64: 8, 24>}, {transform_indices = @transform_1, window_bounds = array<i64: 8, 8>}, {pipeline_mode = #tpu.pipeline_mode<synchronous>, transform_indices = @transform_2, window_bounds = array<i64: 32, 512>}, {pipeline_mode = #tpu.pipeline_mode<synchronous>, transform_indices = @transform_3, window_bounds = array<i64: 512, 512>}, {pipeline_mode = #tpu.pipeline_mode<synchronous>, transform_indices = @transform_4, window_bounds = array<i64: 3, 512>}, {transform_indices = @transform_5, window_bounds = array<i64: 1, 1>}, {transform_indices = @transform_6, window_bounds = array<i64: 8, 1>}]} {
    %c0 = arith.constant 0 : index
    %c0_0 = arith.constant 0 : index
    %0 = vector.load %arg1[%c0, %c0_0] : memref<8x24xf32, #tpu.memory_space<vmem>>, vector<8x24xf32>
    %c0_1 = arith.constant 0 : index
    %c0_2 = arith.constant 0 : index
    %1 = vector.load %arg3[%c0_1, %c0_2] : memref<32x512xf32, #tpu.memory_space<vmem>>, vector<24x512xf32>
    %cst = arith.constant dense<0.000000e+00> : vector<8x512xf32>
    %2 = tpu.matmul %0, %1, %cst {dimension_numbers = #tpu.dot_dimension_numbers<[1], [0], [0], [1], [0, 0, 1, 1], [], []>} : vector<8x24xf32>, vector<24x512xf32>, vector<8x512xf32> -> vector<8x512xf32>
    %c0_3 = arith.constant 0 : index
    %c0_4 = arith.constant 0 : index
    %3 = vector.load %arg2[%c0_3, %c0_4] : memref<8x8xf32, #tpu.memory_space<vmem>>, vector<8x8xf32>
    %c24 = arith.constant 24 : index
    %c0_5 = arith.constant 0 : index
    %4 = vector.load %arg3[%c24, %c0_5] : memref<32x512xf32, #tpu.memory_space<vmem>>, vector<8x512xf32>
    %cst_6 = arith.constant dense<0.000000e+00> : vector<8x512xf32>
    %5 = tpu.matmul %3, %4, %cst_6 {dimension_numbers = #tpu.dot_dimension_numbers<[1], [0], [0], [1], [0, 0, 1, 1], [], []>} : vector<8x8xf32>, vector<8x512xf32>, vector<8x512xf32> -> vector<8x512xf32>
    %6 = arith.addf %2, %5 : vector<8x512xf32>
    %c0_7 = arith.constant 0 : index
    %c0_8 = arith.constant 0 : index
    %7 = vector.load %arg5[%c0_7, %c0_8] : memref<3x512xf32, #tpu.memory_space<vmem>>, vector<1x512xf32>
    %8 = vector.broadcast %7 : vector<1x512xf32> to vector<8x512xf32>
    %9 = arith.addf %6, %8 : vector<8x512xf32>
    %cst_9 = arith.constant 0.000000e+00 : f32
    %10 = vector.broadcast %cst_9 : f32 to vector<8x512xf32>
    %11 = arith.maximumf %9, %10 : vector<8x512xf32>
    %12 = arith.truncf %11 : vector<8x512xf32> to vector<8x512xbf16>
    %c0_10 = arith.constant 0 : index
    %c0_11 = arith.constant 0 : index
    %13 = vector.load %arg4[%c0_10, %c0_11] : memref<512x512xbf16, #tpu.memory_space<vmem>>, vector<512x512xbf16>
    %cst_12 = arith.constant dense<0.000000e+00> : vector<8x512xf32>
    %14 = tpu.matmul %12, %13, %cst_12 {dimension_numbers = #tpu.dot_dimension_numbers<[1], [0], [0], [1], [0, 0, 1, 1], [], []>} : vector<8x512xbf16>, vector<512x512xbf16>, vector<8x512xf32> -> vector<8x512xf32>
    %c1 = arith.constant 1 : index
    %c0_13 = arith.constant 0 : index
    %15 = vector.load %arg5[%c1, %c0_13] : memref<3x512xf32, #tpu.memory_space<vmem>>, vector<1x512xf32>
    %16 = vector.broadcast %15 : vector<1x512xf32> to vector<8x512xf32>
    %17 = arith.addf %14, %16 : vector<8x512xf32>
    %cst_14 = arith.constant 0.000000e+00 : f32
    %18 = vector.broadcast %cst_14 : f32 to vector<8x512xf32>
    %19 = arith.maximumf %17, %18 : vector<8x512xf32>
    %c2 = arith.constant 2 : index
    %c0_15 = arith.constant 0 : index
    %20 = vector.load %arg5[%c2, %c0_15] : memref<3x512xf32, #tpu.memory_space<vmem>>, vector<1x512xf32>
    %21 = vector.broadcast %20 : vector<1x512xf32> to vector<8x512xf32>
    %22 = arith.mulf %19, %21 : vector<8x512xf32>
    %cst_16 = arith.constant dense<0.000000e+00> : vector<8xf32>
    %23 = vector.multi_reduction <add>, %22, %cst_16 [1] : vector<8x512xf32> to vector<8xf32>
    %24 = vector.shape_cast %23 : vector<8xf32> to vector<8x1xf32>
    %c0_17 = arith.constant 0 : index
    %c0_18 = arith.constant 0 : index
    %25 = memref.load %arg6[%c0_17, %c0_18] : memref<1x1xf32, #tpu.memory_space<smem>>
    %26 = vector.broadcast %25 : f32 to vector<8x1xf32>
    %27 = arith.addf %24, %26 : vector<8x1xf32>
    %c0_19 = arith.constant 0 : index
    %c0_20 = arith.constant 0 : index
    %28 = vector.load %arg7[%c0_19, %c0_20] : memref<8x1xf32, #tpu.memory_space<vmem>>, vector<8x1xf32>
    tpu.vector_store %arg7[%c0_19, %c0_20], %27 {strides = array<i32>} : memref<8x1xf32, #tpu.memory_space<vmem>>, vector<8x1xf32>,
    return
  }
  func.func @transform_0(%arg0: i32) -> (i32, i32) {
    %c0_i32 = arith.constant 0 : i32
    %c0_i32_0 = arith.constant 0 : i32
    return %arg0, %c0_i32 : i32, i32
  }
  func.func @transform_1(%arg0: i32) -> (i32, i32) {
    %c0_i32 = arith.constant 0 : i32
    %c0_i32_0 = arith.constant 0 : i32
    return %arg0, %c0_i32 : i32, i32
  }
  func.func @transform_2(%arg0: i32) -> (i32, i32) {
    %c0_i32 = arith.constant 0 : i32
    %c0_i32_0 = arith.constant 0 : i32
    %c0_i32_1 = arith.constant 0 : i32
    return %c0_i32, %c0_i32_0 : i32, i32
  }
  func.func @transform_3(%arg0: i32) -> (i32, i32) {
    %c0_i32 = arith.constant 0 : i32
    %c0_i32_0 = arith.constant 0 : i32
    %c0_i32_1 = arith.constant 0 : i32
    return %c0_i32, %c0_i32_0 : i32, i32
  }
  func.func @transform_4(%arg0: i32) -> (i32, i32) {
    %c0_i32 = arith.constant 0 : i32
    %c0_i32_0 = arith.constant 0 : i32
    %c0_i32_1 = arith.constant 0 : i32
    return %c0_i32, %c0_i32_0 : i32, i32
  }
  func.func @transform_5(%arg0: i32) -> (i32, i32) {
    %c0_i32 = arith.constant 0 : i32
    %c0_i32_0 = arith.constant 0 : i32
    %c0_i32_1 = arith.constant 0 : i32
    return %c0_i32, %c0_i32_0 : i32, i32
  }
  func.func @transform_6(%arg0: i32) -> (i32, i32) {
    %c0_i32 = arith.constant 0 : i32
    %c0_i32_0 = arith.constant 0 : i32
    return %arg0, %c0_i32 : i32, i32
  }
}

</mosaic_0001>

<bundles_post_ra>
// kernel: critic_forward.1
= control target key start
LH: loop header
LB: loop body
LE: loop exit
PB: predicated region body
PF: predicated region fallthrough
CT: control target
= control target key end

     0   :  { %12 = vsyncpa [#allocation4], 0  ;;  %s2009_s0 = inlined_call_operand.hbm [shape: f32[8,24], index: 0, kind: input, shape index: {}]   ;;  %s2010_s1 = inlined_call_operand.hbm [shape: f32[8,8], index: 1, kind: input, shape index: {}]   ;;  %s2011_s2 = inlined_call_operand.hbm [shape: f32[32,512], index: 2, kind: input, shape index: {}]   ;;  %s2012_s3 = inlined_call_operand.hbm [shape: bf16[512,512], index: 3, kind: input, shape index: {}]   ;;  %s2013_s4 = inlined_call_operand.vmem [shape: f32[3,512], index: 4, kind: input, shape index: {}]   ;;  %s2014_s5 = inlined_call_operand.<no memory space> [shape: f32[1,1], index: 5, kind: input, shape index: {}]   ;;  %s2015_s6 = inlined_call_operand.vmem [shape: f32[8,1], index: 6, kind: output, shape index: {}]  }
   0x1   :  { %13 = vsyncpa [#allocation6], 0 }
   0x2   :  { %14 = vsyncpa [#allocation9], 0  ;;  %s1875_s21 = smov [#allocation5]   ;;  %s1876_s23 = smov [#allocation3]  }
   0x3   :  { %s31_s22 = sshll.u32 %s1875_s21, 4  ;;  %s21_s24 = sshll.u32 %s1876_s23, 4  ;;  %s32_s22 = int_to_ptr.vmem [resolvable:$true] %s31_s22  ;;  %s22_s24 = int_to_ptr.vmem [resolvable:$true] %s21_s24 }
   0x4   :  { %s1781_s27 = scalar_lea.hbm %s2010_s1, 128 }
   0x5   :  { %p1782_p0 = scmp.ne.s32.totalorder %s2010_s1, %s1781_s27  ;;  %p1785_p1 = scmp.lt.u32.totalorder %s1781_s27, %s2010_s1 }
   0x7   :  { %p1787_p2 = pnand %p1785_p1, %p1782_p0 }
   0x9   :  { %1790 = shalt.err (!%p1787_p2)
}
   0xa   :  { %s1791_s8 = scalar_lea.vmem %s32_s22, 128  ;;  %p1796_p4 = scmp.lt.s32.totalorder %s32_s22, %s32_s22 }
   0xb   :  { %p1792_p3 = scmp.ne.s32.totalorder %s32_s22, %s1791_s8  ;;  %p1797_p5 = scmp.lt.s32.totalorder %s1791_s8, %s1791_s8 }
   0xd   :  { %p1798_p6 = por %p1797_p5, %p1796_p4 }
   0xf   :  { %p1799_p7 = pnand %p1798_p6, %p1792_p3 }
  0x11   :  { %1802 = shalt.err (!%p1799_p7)
}
  0x12   :  { %34 = dma.hbm_to_vmem [thread:$0]  %s2010_s1, 128, %s32_s22, [#allocation6]  }
  0x13   :  { %s1803_s13 = scalar_lea.hbm %s2009_s0, 128 }
  0x14   :  { %p1804_p8 = scmp.ne.s32.totalorder %s2009_s0, %s1803_s13  ;;  %p1807_p9 = scmp.lt.u32.totalorder %s1803_s13, %s2009_s0 }
  0x16   :  { %p1809_p10 = pnand %p1807_p9, %p1804_p8 }
  0x18   :  { %1812 = shalt.err (!%p1809_p10)
}
  0x19   :  { %s1813_s18 = scalar_lea.vmem %s22_s24, 128  ;;  %p1818_p12 = scmp.lt.s32.totalorder %s22_s24, %s22_s24 }
  0x1a   :  { %p1814_p11 = scmp.ne.s32.totalorder %s22_s24, %s1813_s18  ;;  %p1819_p13 = scmp.lt.s32.totalorder %s1813_s18, %s1813_s18 }
  0x1c   :  { %p1820_p0 = por %p1819_p13, %p1818_p12 }
  0x1e   :  { %p1821_p1 = pnand %p1820_p0, %p1814_p11 }
  0x20   :  { %1824 = shalt.err (!%p1821_p1)
}
  0x21   :  { %24 = dma.hbm_to_vmem [thread:$0]  %s2009_s0, 128, %s22_s24, [#allocation4]  }
  0x22   :  { %s1877_s20 = smov [#allocation7]   ;;  %s1825_s25 = scalar_lea.hbm %s2011_s2, 2048 }
  0x23   :  { %s40_s21 = sshll.u32 %s1877_s20, 4  ;;  %p1826_p2 = scmp.ne.s32.totalorder %s2011_s2, %s1825_s25  ;;  %s41_s21 = int_to_ptr.vmem [resolvable:$true] %s40_s21 }
  0x24   :  { %p1829_p3 = scmp.lt.u32.totalorder %s1825_s25, %s2011_s2 }
  0x26   :  { %p1831_p4 = pnand %p1829_p3, %p1826_p2 }
  0x28   :  { %1834 = shalt.err (!%p1831_p4)
}
  0x29   :  { %s1835_s30 = scalar_lea.vmem %s41_s21, 2048  ;;  %p1840_p6 = scmp.lt.s32.totalorder %s41_s21, %s41_s21 }
  0x2a   :  { %p1836_p5 = scmp.ne.s32.totalorder %s41_s21, %s1835_s30  ;;  %p1841_p7 = scmp.lt.s32.totalorder %s1835_s30, %s1835_s30 }
  0x2c   :  { %p1842_p8 = por %p1841_p7, %p1840_p6 }
  0x2e   :  { %p1843_p9 = pnand %p1842_p8, %p1836_p5 }
  0x30   :  { %1846 = shalt.err (!%p1843_p9)
}
  0x31   :  { %s1878_s0 = smov 512   ;;  %s1879_s24 = smov 32  }
  0x32   :  { %46 = dma.hbm_to_vmem [thread:$0]  %s2011_s2, 2048, %s41_s21, [#allocation6], %s1878_s0, %s1878_s0, %s1879_s24  }
  0x33   :  { %s1880_s9 = smov [#allocation8]   ;;  %s1847_s13 = scalar_lea.hbm %s2012_s3, 16384 }
  0x34   :  { %s52_s10 = sshll.u32 %s1880_s9, 4  ;;  %p1848_p10 = scmp.ne.s32.totalorder %s2012_s3, %s1847_s13  ;;  %s53_s10 = int_to_ptr.vmem [resolvable:$true] %s52_s10 }
  0x35   :  { %p1851_p11 = scmp.lt.u32.totalorder %s1847_s13, %s2012_s3 }
  0x37   :  { %p1853_p12 = pnand %p1851_p11, %p1848_p10 }
  0x39   :  { %1856 = shalt.err (!%p1853_p12)
}
  0x3a   :  { %s1857_s18 = scalar_lea.vmem %s53_s10, 16384  ;;  %p1862_p0 = scmp.lt.s32.totalorder %s53_s10, %s53_s10 }
  0x3b   :  { %p1858_p13 = scmp.ne.s32.totalorder %s53_s10, %s1857_s18  ;;  %p1863_p1 = scmp.lt.s32.totalorder %s1857_s18, %s1857_s18 }
  0x3d   :  { %p1864_p2 = por %p1863_p1, %p1862_p0 }
  0x3f   :  { %p1865_p3 = pnand %p1864_p2, %p1858_p13 }
  0x41   :  { %1868 = shalt.err (!%p1865_p3)
}
  0x42   :  { %s1881_s2 = smov 256   ;;  %s1882_s1 = smov 16  }
  0x43   :  { %58 = dma.hbm_to_vmem [thread:$0]  %s2012_s3, 16384, %s53_s10, [#allocation9], %s1881_s2, %s1881_s2, %s1882_s1  }
  0x44   :  { %1869 = dma.done.wait [#allocation4], 128  }
  0x45   :  { %1870 = vsyncadd [#allocation4], 4294967168 }
  0x46   :  { %1871 = dma.done.wait [#allocation6], 2176  }
  0x47   :  { %1872 = vsyncadd [#allocation6], 4294965120 }
  0x48   :  { %1873 = dma.done.wait [#allocation9], 16384  }
  0x49   :  { %1874 = vsyncadd [#allocation9], 4294950912  ;;  %v1883_v0 = vmov 0.0   ;;  %v90_v1 = vld [vmem:[#allocation7 + $0x68] sm:$0xff]  ;;  %v89_v2 = vld [vmem:[#allocation7 + $0x60] sm:$0xff]  ;;  %vm93_vm0 = vcmask 64512  }
  0x4a   :  { %161 = vmatprep.mubr.f32.mxu0 %v1883_v0  ;;  %232 = vmatprep.mubr.f32.mxu1 %v1883_v0  ;;  %v88_v3 = vld [vmem:[#allocation5] sm:$0xff]  ;;  %v77_v4 = vld [vmem:[#allocation7 + $0x8] sm:$0xff]  ;;  %v76_v6 = vld [vmem:[#allocation7] sm:$0xff]  ;;  %vm239_vm1 = vcmask 195584   ;;  %vm1413_vm2 = vcmask 7168  }
  0x4b   :  { %97 = vmatprep.subr.mxu0 %v90_v1  ;;  %v81_v5 = vld [vmem:[#allocation7 + $0x28] sm:$0xff]  ;;  %v80_v8 = vld [vmem:[#allocation7 + $0x20] sm:$0xff]  ;;  %v92_v11 = vld [vmem:[#allocation7 + $0x78] sm:$0xff] }
  0x4c   :  { %98 = vmatpush1.msra.mxu0 %v89_v2  ;;  %v1556_v7 = vpack.c.bf16 %v81_v5, %v77_v4  ;;  %v1558_v9 = vpack.c.bf16 %v80_v8, %v76_v6  ;;  %v85_v10 = vld [vmem:[#allocation7 + $0x48] sm:$0xff]  ;;  %v91_v12 = vld [vmem:[#allocation7 + $0x70] sm:$0xff]  ;;  %v79_v13 = vld [vmem:[#allocation7 + $0x18] sm:$0xff]  ;;  %168 = vmatprep.subr.mxu1 %v92_v11 }
  0x4d   :  { %1422 = vmatmul.mubr.msk.f32.vlgmr.msra.gmra.mrb[0].mxu0 %vm93_vm0, %v88_v3  ;;  %v83_v14 = vld [vmem:[#allocation7 + $0x38] sm:$0xff]  ;;  %v78_v15 = vld [vmem:[#allocation7 + $0x10] sm:$0xff]  ;;  %v84_v16 = vld [vmem:[#allocation7 + $0x40] sm:$0xff]  ;;  %169 = vmatpush1.msra.mxu1 %v91_v12 }
  0x4e   :  { %1557 = vmatprep.subr.bf16.mxu0 %v1556_v7  ;;  %307 = vmatprep.mubr.f32.mxu0 %v1883_v0  ;;  %v1560_v17 = vpack.c.bf16 %v83_v14, %v79_v13  ;;  %v82_v18 = vld [vmem:[#allocation7 + $0x30] sm:$0xff]  ;;  %v87_v21 = vld [vmem:[#allocation7 + $0x58] sm:$0xff] }
  0x4f   :  { %1559 = vmatpush1.bf16.msra.mxu0 %v1558_v9  ;;  %v75_v19 = vld [vmem:[#allocation3] sm:$0xff]  ;;  %v1562_v20 = vpack.c.bf16 %v82_v18, %v78_v15  ;;  %1423 = vmatmul.mubr.msk.f32.vlgmr.msra.gmra.mrb[0].mxu1 %vm93_vm0, %v88_v3  ;;  %v1594_v25 = vld [vmem:[#allocation8 + $0xc] ss:$16 sps:$4 sm:$0xff]   ;;  %v1592_v27 = vld [vmem:[#allocation8 + $0x8] ss:$16 sps:$4 sm:$0xff]  }
  0x50   :  { %247 = vmatprep.subr.mxu0 %v85_v10  ;;  %1561 = vmatprep.subr.bf16.mxu1 %v1560_v17  ;;  %v1591_v22 = vld [vmem:[#allocation8 + $0x4] ss:$16 sps:$4 sm:$0xff]   ;;  %v1589_v24 = vld [vmem:[#allocation8] ss:$16 sps:$4 sm:$0xff]   ;;  %v1600_v29 = vld [vmem:[#allocation8 + $0x2c] ss:$16 sps:$4 sm:$0xff]  }
  0x51   :  { %1563 = vmatpush1.bf16.msra.mxu1 %v1562_v20  ;;  %v86_v23 = vld [vmem:[#allocation7 + $0x50] sm:$0xff]  ;;  %378 = vmatprep.mubr.f32.mxu1 %v1883_v0  ;;  %v1598_v31 = vld [vmem:[#allocation8 + $0x28] ss:$16 sps:$4 sm:$0xff]   ;;  %v1606_v33 = vld [vmem:[#allocation8 + $0x4c] ss:$16 sps:$4 sm:$0xff]  }
  0x52   :  { %318 = vmatprep.subr.mxu1 %v87_v21  ;;  %v1597_v26 = vld [vmem:[#allocation8 + $0x24] ss:$16 sps:$4 sm:$0xff]   ;;  %v1595_v28 = vld [vmem:[#allocation8 + $0x20] ss:$16 sps:$4 sm:$0xff]   ;;  %v1604_v35 = vld [vmem:[#allocation8 + $0x48] ss:$16 sps:$4 sm:$0xff]  }
  0x53   :  { %248 = vmatpush1.msra.mxu0 %v84_v16  ;;  %v1603_v30 = vld [vmem:[#allocation8 + $0x44] ss:$16 sps:$4 sm:$0xff]   ;;  %v1601_v32 = vld [vmem:[#allocation8 + $0x40] ss:$16 sps:$4 sm:$0xff]   ;;  %v1612_v37 = vld [vmem:[#allocation8 + $0x6c] ss:$16 sps:$4 sm:$0xff]  }
  0x54   :  { %1210 = vmatprep.subr.bf16.mxu0 %v1591_v22  ;;  %v1609_v34 = vld [vmem:[#allocation8 + $0x64] ss:$16 sps:$4 sm:$0xff]   ;;  %v1607_v36 = vld [vmem:[#allocation8 + $0x60] ss:$16 sps:$4 sm:$0xff]   ;;  %v1610_v39 = vld [vmem:[#allocation8 + $0x68] ss:$16 sps:$4 sm:$0xff]  }
  0x55   :  { %1424 = vmatmul.mubr.msk.f32.vlgmr.msra.gmra.mrb[0].mxu0 %vm239_vm1, %v75_v19  ;;  %319 = vmatpush1.msra.mxu1 %v86_v23  ;;  %v1615_v38 = vld [vmem:[#allocation8 + $0x84] ss:$16 sps:$4 sm:$0xff]   ;;  %v1613_v40 = vld [vmem:[#allocation8 + $0x80] ss:$16 sps:$4 sm:$0xff]   ;;  %v1618_v41 = vld [vmem:[#allocation8 + $0x8c] ss:$16 sps:$4 sm:$0xff]  }
  0x56   :  { %1211 = vmatpush1.bf16.msra.mxu0 %v1589_v24  ;;  %1292 = vmatprep.subr.bf16.mxu1 %v1594_v25  ;;  %v1621_v42 = vld [vmem:[#allocation8 + $0xa4] ss:$16 sps:$4 sm:$0xff]   ;;  %v1616_v43 = vld [vmem:[#allocation8 + $0x88] ss:$16 sps:$4 sm:$0xff]   ;;  %v1619_v44 = vld [vmem:[#allocation8 + $0xa0] ss:$16 sps:$4 sm:$0xff]   ;;  %v387_v25 = vlaneseq }
  0x57   :  { %1212 = vmatprep.subr.bf16.mxu0 %v1597_v26  ;;  %1425 = vmatmul.mubr.msk.f32.vlgmr.msra.gmra.mrb[0].mxu1 %vm239_vm1, %v75_v19  ;;  %v1624_v45 = vld [vmem:[#allocation8 + $0xac] ss:$16 sps:$4 sm:$0xff]   ;;  %v1627_v46 = vld [vmem:[#allocation8 + $0xc4] ss:$16 sps:$4 sm:$0xff]   ;;  %v1622_v47 = vld [vmem:[#allocation8 + $0xa8] ss:$16 sps:$4 sm:$0xff]  }
  0x58   :  { %1293 = vmatpush1.bf16.msra.mxu1 %v1592_v27  ;;  %v1625_v48 = vld [vmem:[#allocation8 + $0xc0] ss:$16 sps:$4 sm:$0xff]   ;;  %v1630_v49 = vld [vmem:[#allocation8 + $0xcc] ss:$16 sps:$4 sm:$0xff]   ;;  %v1633_v50 = vld [vmem:[#allocation8 + $0xe4] ss:$16 sps:$4 sm:$0xff]  }
  0x59   :  { %1294 = vmatprep.subr.bf16.mxu1 %v1600_v29  ;;  %v1628_v51 = vld [vmem:[#allocation8 + $0xc8] ss:$16 sps:$4 sm:$0xff]   ;;  %v1631_v52 = vld [vmem:[#allocation8 + $0xe0] ss:$16 sps:$4 sm:$0xff]   ;;  %v1636_v53 = vld [vmem:[#allocation8 + $0xec] ss:$16 sps:$4 sm:$0xff]  }
  0x5a   :  { %1213 = vmatpush1.bf16.msra.mxu0 %v1595_v28  ;;  %v1639_v54 = vld [vmem:[#allocation8 + $0x104] ss:$16 sps:$4 sm:$0xff]   ;;  %v1634_v55 = vld [vmem:[#allocation8 + $0xe8] ss:$16 sps:$4 sm:$0xff]   ;;  %v1637_v56 = vld [vmem:[#allocation8 + $0x100] ss:$16 sps:$4 sm:$0xff]  }
  0x5b   :  { %1214 = vmatprep.subr.bf16.mxu0 %v1603_v30  ;;  %v1642_v57 = vld [vmem:[#allocation8 + $0x10c] ss:$16 sps:$4 sm:$0xff]   ;;  %v1645_v58 = vld [vmem:[#allocation8 + $0x124] ss:$16 sps:$4 sm:$0xff]   ;;  %v1640_v59 = vld [vmem:[#allocation8 + $0x108] ss:$16 sps:$4 sm:$0xff]  }
  0x5c   :  { %1295 = vmatpush1.bf16.msra.mxu1 %v1598_v31  ;;  %v1643_v60 = vld [vmem:[#allocation8 + $0x120] ss:$16 sps:$4 sm:$0xff]   ;;  %v1648_v61 = vld [vmem:[#allocation8 + $0x12c] ss:$16 sps:$4 sm:$0xff]   ;;  %v1651_v62 = vld [vmem:[#allocation8 + $0x144] ss:$16 sps:$4 sm:$0xff]  }
  0x5d   :  { %1296 = vmatprep.subr.bf16.mxu1 %v1606_v33  ;;  %v1646_v63 = vld [vmem:[#allocation8 + $0x128] ss:$16 sps:$4 sm:$0xff]   ;;  %v1649_v0 = vld [vmem:[#allocation8 + $0x140] ss:$16 sps:$4 sm:$0xff]   ;;  %v1654_v1 = vld [vmem:[#allocation8 + $0x14c] ss:$16 sps:$4 sm:$0xff]  }
  0x5e   :  { %1215 = vmatpush1.bf16.msra.mxu0 %v1601_v32  ;;  %v1657_v2 = vld [vmem:[#allocation8 + $0x164] ss:$16 sps:$4 sm:$0xff]   ;;  %v1652_v3 = vld [vmem:[#allocation8 + $0x148] ss:$16 sps:$4 sm:$0xff]   ;;  %v1655_v4 = vld [vmem:[#allocation8 + $0x160] ss:$16 sps:$4 sm:$0xff]  }
  0x5f   :  { %1216 = vmatprep.subr.bf16.mxu0 %v1609_v34  ;;  %v1660_v5 = vld [vmem:[#allocation8 + $0x16c] ss:$16 sps:$4 sm:$0xff]   ;;  %v1663_v6 = vld [vmem:[#allocation8 + $0x184] ss:$16 sps:$4 sm:$0xff]   ;;  %v1658_v7 = vld [vmem:[#allocation8 + $0x168] ss:$16 sps:$4 sm:$0xff]  }
  0x60   :  { %1297 = vmatpush1.bf16.msra.mxu1 %v1604_v35  ;;  %v1661_v8 = vld [vmem:[#allocation8 + $0x180] ss:$16 sps:$4 sm:$0xff]   ;;  %v1666_v9 = vld [vmem:[#allocation8 + $0x18c] ss:$16 sps:$4 sm:$0xff]   ;;  %v1669_v10 = vld [vmem:[#allocation8 + $0x1a4] ss:$16 sps:$4 sm:$0xff]  }
  0x61   :  { %1298 = vmatprep.subr.bf16.mxu1 %v1612_v37  ;;  %v1664_v11 = vld [vmem:[#allocation8 + $0x188] ss:$16 sps:$4 sm:$0xff]   ;;  %v1667_v12 = vld [vmem:[#allocation8 + $0x1a0] ss:$16 sps:$4 sm:$0xff]   ;;  %v1672_v13 = vld [vmem:[#allocation8 + $0x1ac] ss:$16 sps:$4 sm:$0xff]  }
  0x62   :  { %1217 = vmatpush1.bf16.msra.mxu0 %v1607_v36  ;;  %v1670_v14 = vld [vmem:[#allocation8 + $0x1a8] ss:$16 sps:$4 sm:$0xff]   ;;  %v1675_v15 = vld [vmem:[#allocation8 + $0x1c4] ss:$16 sps:$4 sm:$0xff]   ;;  %v1673_v16 = vld [vmem:[#allocation8 + $0x1c0] ss:$16 sps:$4 sm:$0xff]  }
  0x63   :  { %1218 = vmatprep.subr.bf16.mxu0 %v1615_v38  ;;  %v1676_v17 = vld [vmem:[#allocation8 + $0x1c8] ss:$16 sps:$4 sm:$0xff]   ;;  %v1678_v18 = vld [vmem:[#allocation8 + $0x1cc] ss:$16 sps:$4 sm:$0xff]   ;;  %v1681_v19 = vld [vmem:[#allocation8 + $0x1e4] ss:$16 sps:$4 sm:$0xff]  }
  0x64   :  { %1299 = vmatpush1.bf16.msra.mxu1 %v1610_v39  ;;  %v1684_v20 = vld [vmem:[#allocation8 + $0x1ec] ss:$16 sps:$4 sm:$0xff]   ;;  %v1679_v21 = vld [vmem:[#allocation8 + $0x1e0] ss:$16 sps:$4 sm:$0xff]   ;;  %v1682_v22 = vld [vmem:[#allocation8 + $0x1e8] ss:$16 sps:$4 sm:$0xff]  }
  0x65   :  { %1300 = vmatprep.subr.bf16.mxu1 %v1618_v41  ;;  %v1687_v23 = vld [vmem:[#allocation8 + $0x204] ss:$16 sps:$4 sm:$0xff]   ;;  %v1690_v24 = vld [vmem:[#allocation8 + $0x20c] ss:$16 sps:$4 sm:$0xff]   ;;  %v388_v26 = vshrl.u32 %v387_v25, 7 }
  0x66   :  { %1219 = vmatpush1.bf16.msra.mxu0 %v1613_v40  ;;  %v385_v28 = vld [vmem:[%s2013_s4] ss:$4 sm:$0xf] }
  0x67   :  { %1220 = vmatprep.subr.bf16.mxu0 %v1621_v42  ;;  %v1971_v27 = vsub.s32 0, %v388_v26  ;;  %v1976_v29 = vsub.s32 1, %v388_v26  ;;  %v1979_v31 = vsub.s32 2, %v388_v26  ;;  %v1982_v33 = vsub.s32 3, %v388_v26  ;;  %v1750_v25 = vld [vmem:[#allocation8 + $0x34c] ss:$16 sps:$4 sm:$0xff]  }
  0x68   :  { %1301 = vmatpush1.bf16.msra.mxu1 %v1616_v43  ;;  %v1745_v26 = vld [vmem:[#allocation8 + $0x340] ss:$16 sps:$4 sm:$0xff]  }
  0x69   :  { %1302 = vmatprep.subr.bf16.mxu1 %v1624_v45  ;;  %v390_v30 = vrot.slane %v385_v28, %v1971_v27  ;;  %v394_v32 = vrot.slane %v385_v28, %v1976_v29  ;;  %v398_v37 = vrot.slane %v385_v28, %v1979_v31  ;;  %v402_v39 = vrot.slane %v385_v28, %v1982_v33  ;;  %v1748_v28 = vld [vmem:[#allocation8 + $0x348] ss:$16 sps:$4 sm:$0xff]  }
  0x6a   :  { %1221 = vmatpush1.bf16.msra.mxu0 %v1619_v44 }
  0x6b   :  { %1222 = vmatprep.subr.bf16.mxu0 %v1627_v46  ;;  %v1685_v46 = vld [vmem:[#allocation8 + $0x200] ss:$16 sps:$4 sm:$0xff]  }
  0x6c   :  { %1303 = vmatpush1.bf16.msra.mxu1 %v1622_v47  ;;  %v1688_v47 = vld [vmem:[#allocation8 + $0x208] ss:$16 sps:$4 sm:$0xff]  }
  0x6d   :  { %1304 = vmatprep.subr.bf16.mxu1 %v1630_v49 }
  0x6e   :  { %1223 = vmatpush1.bf16.msra.mxu0 %v1625_v48 }
  0x6f   :  { %1224 = vmatprep.subr.bf16.mxu0 %v1633_v50  ;;  %v1693_v50 = vld [vmem:[#allocation8 + $0x224] ss:$16 sps:$4 sm:$0xff]  }
  0x70   :  { %1305 = vmatpush1.bf16.msra.mxu1 %v1628_v51  ;;  %v1696_v51 = vld [vmem:[#allocation8 + $0x22c] ss:$16 sps:$4 sm:$0xff]  }
  0x71   :  { %1306 = vmatprep.subr.bf16.mxu1 %v1636_v53  ;;  %v1691_v53 = vld [vmem:[#allocation8 + $0x220] ss:$16 sps:$4 sm:$0xff]  }
  0x72   :  { %1225 = vmatpush1.bf16.msra.mxu0 %v1631_v52 }
  0x73   :  { %1226 = vmatprep.subr.bf16.mxu0 %v1639_v54  ;;  %v1694_v54 = vld [vmem:[#allocation8 + $0x228] ss:$16 sps:$4 sm:$0xff]  }
  0x74   :  { %1307 = vmatpush1.bf16.msra.mxu1 %v1634_v55 }
  0x75   :  { %1308 = vmatprep.subr.bf16.mxu1 %v1642_v57  ;;  %v1702_v57 = vld [vmem:[#allocation8 + $0x24c] ss:$16 sps:$4 sm:$0xff]  }
  0x76   :  { %1227 = vmatpush1.bf16.msra.mxu0 %v1637_v56  ;;  %v1699_v56 = vld [vmem:[#allocation8 + $0x244] ss:$16 sps:$4 sm:$0xff]  }
  0x77   :  { %1228 = vmatprep.subr.bf16.mxu0 %v1645_v58  ;;  %v1697_v58 = vld [vmem:[#allocation8 + $0x240] ss:$16 sps:$4 sm:$0xff]  }
  0x78   :  { %1309 = vmatpush1.bf16.msra.mxu1 %v1640_v59  ;;  %v1700_v59 = vld [vmem:[#allocation8 + $0x248] ss:$16 sps:$4 sm:$0xff]  }
  0x79   :  { %1310 = vmatprep.subr.bf16.mxu1 %v1648_v61  ;;  %v1708_v61 = vld [vmem:[#allocation8 + $0x26c] ss:$16 sps:$4 sm:$0xff]  }
  0x7a   :  { %1229 = vmatpush1.bf16.msra.mxu0 %v1643_v60  ;;  %v1705_v60 = vld [vmem:[#allocation8 + $0x264] ss:$16 sps:$4 sm:$0xff]  }
  0x7b   :  { %1230 = vmatprep.subr.bf16.mxu0 %v1651_v62  ;;  %v1703_v62 = vld [vmem:[#allocation8 + $0x260] ss:$16 sps:$4 sm:$0xff]  }
  0x7c   :  { %1311 = vmatpush1.bf16.msra.mxu1 %v1646_v63  ;;  %v1706_v63 = vld [vmem:[#allocation8 + $0x268] ss:$16 sps:$4 sm:$0xff]  }
  0x7d   :  { %1312 = vmatprep.subr.bf16.mxu1 %v1654_v1  ;;  %v1714_v1 = vld [vmem:[#allocation8 + $0x28c] ss:$16 sps:$4 sm:$0xff]  }
  0x7e   :  { %1231 = vmatpush1.bf16.msra.mxu0 %v1649_v0  ;;  %v1711_v0 = vld [vmem:[#allocation8 + $0x284] ss:$16 sps:$4 sm:$0xff]  }
  0x7f   :  { %1232 = vmatprep.subr.bf16.mxu0 %v1657_v2  ;;  %v1709_v2 = vld [vmem:[#allocation8 + $0x280] ss:$16 sps:$4 sm:$0xff]  }
  0x80   :  { %1313 = vmatpush1.bf16.msra.mxu1 %v1652_v3  ;;  %v1712_v3 = vld [vmem:[#allocation8 + $0x288] ss:$16 sps:$4 sm:$0xff]  }
  0x81   :  { %1314 = vmatprep.subr.bf16.mxu1 %v1660_v5  ;;  %v1720_v5 = vld [vmem:[#allocation8 + $0x2ac] ss:$16 sps:$4 sm:$0xff]  }
  0x82   :  { %1233 = vmatpush1.bf16.msra.mxu0 %v1655_v4  ;;  %v1717_v4 = vld [vmem:[#allocation8 + $0x2a4] ss:$16 sps:$4 sm:$0xff]  }
  0x83   :  { %1234 = vmatprep.subr.bf16.mxu0 %v1663_v6  ;;  %v1715_v6 = vld [vmem:[#allocation8 + $0x2a0] ss:$16 sps:$4 sm:$0xff]  }
  0x84   :  { %1315 = vmatpush1.bf16.msra.mxu1 %v1658_v7  ;;  %v1718_v7 = vld [vmem:[#allocation8 + $0x2a8] ss:$16 sps:$4 sm:$0xff]  }
  0x85   :  { %1316 = vmatprep.subr.bf16.mxu1 %v1666_v9  ;;  %v1726_v9 = vld [vmem:[#allocation8 + $0x2cc] ss:$16 sps:$4 sm:$0xff]  }
  0x86   :  { %1235 = vmatpush1.bf16.msra.mxu0 %v1661_v8  ;;  %v1723_v8 = vld [vmem:[#allocation8 + $0x2c4] ss:$16 sps:$4 sm:$0xff]  }
  0x87   :  { %1236 = vmatprep.subr.bf16.mxu0 %v1669_v10  ;;  %v1721_v10 = vld [vmem:[#allocation8 + $0x2c0] ss:$16 sps:$4 sm:$0xff]  }
  0x88   :  { %1317 = vmatpush1.bf16.msra.mxu1 %v1664_v11  ;;  %v1724_v11 = vld [vmem:[#allocation8 + $0x2c8] ss:$16 sps:$4 sm:$0xff]  }
  0x89   :  { %1318 = vmatprep.subr.bf16.mxu1 %v1672_v13  ;;  %v1732_v13 = vld [vmem:[#allocation8 + $0x2ec] ss:$16 sps:$4 sm:$0xff]  }
  0x8a   :  { %1237 = vmatpush1.bf16.msra.mxu0 %v1667_v12  ;;  %v1729_v12 = vld [vmem:[#allocation8 + $0x2e4] ss:$16 sps:$4 sm:$0xff]  }
  0x8b   :  { %1238 = vmatprep.subr.bf16.mxu0 %v1675_v15  ;;  %v1730_v15 = vld [vmem:[#allocation8 + $0x2e8] ss:$16 sps:$4 sm:$0xff]  }
  0x8c   :  { %1319 = vmatpush1.bf16.msra.mxu1 %v1670_v14  ;;  %v1727_v14 = vld [vmem:[#allocation8 + $0x2e0] ss:$16 sps:$4 sm:$0xff]  }
  0x8d   :  { %1320 = vmatprep.subr.bf16.mxu1 %v1678_v18  ;;  %v1733_v18 = vld [vmem:[#allocation8 + $0x300] ss:$16 sps:$4 sm:$0xff]  }
  0x8e   :  { %1239 = vmatpush1.bf16.msra.mxu0 %v1673_v16  ;;  %v1735_v16 = vld [vmem:[#allocation8 + $0x304] ss:$16 sps:$4 sm:$0xff]  }
  0x8f   :  { %1240 = vmatprep.subr.bf16.mxu0 %v1681_v19  ;;  %v1736_v19 = vld [vmem:[#allocation8 + $0x308] ss:$16 sps:$4 sm:$0xff]  }
  0x90   :  { %1321 = vmatpush1.bf16.msra.mxu1 %v1676_v17  ;;  %v1738_v17 = vld [vmem:[#allocation8 + $0x30c] ss:$16 sps:$4 sm:$0xff]  }
  0x91   :  { %1322 = vmatprep.subr.bf16.mxu1 %v1684_v20  ;;  %v1741_v20 = vld [vmem:[#allocation8 + $0x324] ss:$16 sps:$4 sm:$0xff]  }
  0x92   :  { %1241 = vmatpush1.bf16.msra.mxu0 %v1679_v21  ;;  %v1744_v21 = vld [vmem:[#allocation8 + $0x32c] ss:$16 sps:$4 sm:$0xff]  }
  0x93   :  { %1251 = vmatprep.subr.bf16.mxu0 %v1687_v23  ;;  %v1742_v23 = vld [vmem:[#allocation8 + $0x328] ss:$16 sps:$4 sm:$0xff]  }
  0x94   :  { %1323 = vmatpush1.bf16.msra.mxu1 %v1682_v22  ;;  %v1739_v22 = vld [vmem:[#allocation8 + $0x320] ss:$16 sps:$4 sm:$0xff]  }
  0x95   :  { %1333 = vmatprep.subr.bf16.mxu1 %v1690_v24  ;;  %v1747_v24 = vld [vmem:[#allocation8 + $0x344] ss:$16 sps:$4 sm:$0xff]  }
 0x128   :  { %v309_v34 = vpop.f32.mrb[0].mxu0 }
 0x129   :  { %v407_v35 = vadd.f32 %v390_v30, %v309_v34  ;;  %v311_v36 = vpop.f32.mrb[1].mxu0  ;;  %v1753_v30 = vld [vmem:[#allocation8 + $0x364] ss:$16 sps:$4 sm:$0xff]   ;;  %v1751_v34 = vld [vmem:[#allocation8 + $0x360] ss:$16 sps:$4 sm:$0xff]  }
 0x12a   :  { %v408_v38 = vadd.f32 %v394_v32, %v311_v36  ;;  %v380_v42 = vpop.f32.mrb[0].mxu1  ;;  %v1756_v32 = vld [vmem:[#allocation8 + $0x36c] ss:$16 sps:$4 sm:$0xff]   ;;  %v1759_v36 = vld [vmem:[#allocation8 + $0x384] ss:$16 sps:$4 sm:$0xff]  }
 0x12b   :  { %v411_v40 = vmax.f32 %v407_v35, 0.0  ;;  %v1986_v43 = vadd.f32 %v398_v37, %v380_v42  ;;  %v382_v44 = vpop.f32.mrb[1].mxu1  ;;  %v1754_v35 = vld [vmem:[#allocation8 + $0x368] ss:$16 sps:$4 sm:$0xff]   ;;  %v1762_v37 = vld [vmem:[#allocation8 + $0x38c] ss:$16 sps:$4 sm:$0xff]  }
 0x12c   :  { %v412_v41 = vmax.f32 %v408_v38, 0.0  ;;  %v410_v48 = vadd.f32 %v402_v39, %v382_v44  ;;  %v1757_v38 = vld [vmem:[#allocation8 + $0x380] ss:$16 sps:$4 sm:$0xff]   ;;  %v1760_v39 = vld [vmem:[#allocation8 + $0x388] ss:$16 sps:$4 sm:$0xff]  }
 0x12d   :  { %v415_v49 = vpack.c.bf16 %v411_v40, %v411_v40  ;;  %v1765_v40 = vld [vmem:[#allocation8 + $0x3a4] ss:$16 sps:$4 sm:$0xff]   ;;  %v1763_v42 = vld [vmem:[#allocation8 + $0x3a0] ss:$16 sps:$4 sm:$0xff]   ;;  %v1766_v44 = vld [vmem:[#allocation8 + $0x3a8] ss:$16 sps:$4 sm:$0xff]  }
 0x12e   :  { %v416_v45 = vpack.c.bf16 %v412_v41, %v412_v41  ;;  %v414_v52 = vmax.f32 %v410_v48, 0.0  ;;  %v1768_v41 = vld [vmem:[#allocation8 + $0x3ac] ss:$16 sps:$4 sm:$0xff]   ;;  %v1772_v48 = vld [vmem:[#allocation8 + $0x3c8] ss:$16 sps:$4 sm:$0xff]  }
 0x130   :  { %1242 = vmatprep.mubr.bf16.mxu0 %v416_v45  ;;  %1324 = vmatprep.mubr.bf16.mxu1 %v416_v45  ;;  %v418_v55 = vpack.c.bf16 %v414_v52, %v414_v52  ;;  %v1771_v45 = vld [vmem:[#allocation8 + $0x3c4] ss:$16 sps:$4 sm:$0xff]   ;;  %v1778_v52 = vld [vmem:[#allocation8 + $0x3e8] ss:$16 sps:$4 sm:$0xff]  }
 0x131   :  { %1243 = vmatmul.mubr.bf16.vlgmr.msra.gmra.mrb[4].mxu0 %v415_v49  ;;  %1325 = vmatmul.mubr.bf16.vlgmr.msra.gmra.mrb[4].mxu1 %v415_v49  ;;  %v1777_v49 = vld [vmem:[#allocation8 + $0x3e4] ss:$16 sps:$4 sm:$0xff]  }
 0x132   :  { %1252 = vmatpush1.bf16.msra.mxu0 %v1685_v46  ;;  %1334 = vmatpush1.bf16.msra.mxu1 %v1688_v47  ;;  %v1774_v46 = vld [vmem:[#allocation8 + $0x3cc] ss:$16 sps:$4 sm:$0xff]   ;;  %v1769_v47 = vld [vmem:[#allocation8 + $0x3c0] ss:$16 sps:$4 sm:$0xff]  }
 0x133   :  { %1253 = vmatprep.subr.bf16.mxu0 %v1693_v50  ;;  %1335 = vmatprep.subr.bf16.mxu1 %v1696_v51  ;;  %v1780_v50 = vld [vmem:[#allocation8 + $0x3ec] ss:$16 sps:$4 sm:$0xff]   ;;  %v1775_v51 = vld [vmem:[#allocation8 + $0x3e0] ss:$16 sps:$4 sm:$0xff]  }
 0x134   :  { %1283 = vmatprep.mubr.bf16.mxu0 %v418_v55  ;;  %1365 = vmatprep.mubr.bf16.mxu1 %v418_v55  ;;  %v1426_v55 = vld [vmem:[%s2013_s4 + $0x1] ss:$4 sm:$0xf] }
 0x136   :  { %1254 = vmatpush1.bf16.msra.mxu0 %v1691_v53  ;;  %1336 = vmatpush1.bf16.msra.mxu1 %v1694_v54  ;;  %v413_v53 = vmax.f32 %v1986_v43, 0.0  ;;  %v557_v43 = vrot.slane %v1426_v55, %v1976_v29 }
 0x137   :  { %1255 = vmatprep.subr.bf16.mxu0 %v1699_v56  ;;  %1337 = vmatprep.subr.bf16.mxu1 %v1702_v57  ;;  %v553_v56 = vrot.slane %v1426_v55, %v1971_v27  ;;  %v561_v57 = vrot.slane %v1426_v55, %v1979_v31 }
 0x138   :  { %v417_v54 = vpack.c.bf16 %v413_v53, %v413_v53 }
 0x13a   :  { %1256 = vmatpush1.bf16.msra.mxu0 %v1697_v58  ;;  %1338 = vmatpush1.bf16.msra.mxu1 %v1700_v59  ;;  %v1555_v58 = vld [vmem:[%s2013_s4 + $0x2] ss:$4 sm:$0xf]  ;;  %v565_v59 = vrot.slane %v1426_v55, %v1982_v33 }
 0x13b   :  { %1257 = vmatprep.subr.bf16.mxu0 %v1705_v60  ;;  %1339 = vmatprep.subr.bf16.mxu1 %v1708_v61 }
 0x13e   :  { %1258 = vmatpush1.bf16.msra.mxu0 %v1703_v62  ;;  %1340 = vmatpush1.bf16.msra.mxu1 %v1706_v63  ;;  %v1384_v63 = vrot.slane %v1555_v58, %v1971_v27  ;;  %v1396_v27 = vrot.slane %v1555_v58, %v1982_v33 }
 0x13f   :  { %1259 = vmatprep.subr.bf16.mxu0 %v1711_v0  ;;  %1341 = vmatprep.subr.bf16.mxu1 %v1714_v1 }
 0x142   :  { %1260 = vmatpush1.bf16.msra.mxu0 %v1709_v2  ;;  %1342 = vmatpush1.bf16.msra.mxu1 %v1712_v3 }
 0x143   :  { %1261 = vmatprep.subr.bf16.mxu0 %v1717_v4  ;;  %1343 = vmatprep.subr.bf16.mxu1 %v1720_v5  ;;  %v1388_v4 = vrot.slane %v1555_v58, %v1976_v29 }
 0x146   :  { %1262 = vmatpush1.bf16.msra.mxu0 %v1715_v6  ;;  %1344 = vmatpush1.bf16.msra.mxu1 %v1718_v7 }
 0x147   :  { %1263 = vmatprep.subr.bf16.mxu0 %v1723_v8  ;;  %1345 = vmatprep.subr.bf16.mxu1 %v1726_v9 }
 0x14a   :  { %1264 = vmatpush1.bf16.msra.mxu0 %v1721_v10  ;;  %1346 = vmatpush1.bf16.msra.mxu1 %v1724_v11 }
 0x14b   :  { %1265 = vmatprep.subr.bf16.mxu0 %v1729_v12  ;;  %1347 = vmatprep.subr.bf16.mxu1 %v1732_v13  ;;  %v1392_v12 = vrot.slane %v1555_v58, %v1979_v31 }
 0x14e   :  { %1266 = vmatpush1.bf16.msra.mxu0 %v1727_v14  ;;  %1348 = vmatpush1.bf16.msra.mxu1 %v1730_v15 }
 0x14f   :  { %1267 = vmatprep.subr.bf16.mxu0 %v1735_v16  ;;  %1349 = vmatprep.subr.bf16.mxu1 %v1738_v17 }
 0x152   :  { %1268 = vmatpush1.bf16.msra.mxu0 %v1733_v18  ;;  %1350 = vmatpush1.bf16.msra.mxu1 %v1736_v19 }
 0x153   :  { %1269 = vmatprep.subr.bf16.mxu0 %v1741_v20  ;;  %1351 = vmatprep.subr.bf16.mxu1 %v1744_v21  ;;  %v1411_v21 = vstv %s2014_s5 }
 0x156   :  { %1270 = vmatpush1.bf16.msra.mxu0 %v1739_v22  ;;  %1352 = vmatpush1.bf16.msra.mxu1 %v1742_v23 }
 0x157   :  { %1271 = vmatprep.subr.bf16.mxu0 %v1747_v24  ;;  %1353 = vmatprep.subr.bf16.mxu1 %v1750_v25 }
 0x15a   :  { %1272 = vmatpush1.bf16.msra.mxu0 %v1745_v26  ;;  %1354 = vmatpush1.bf16.msra.mxu1 %v1748_v28 }
 0x15b   :  { %1273 = vmatprep.subr.bf16.mxu0 %v1753_v30  ;;  %1355 = vmatprep.subr.bf16.mxu1 %v1756_v32 }
 0x15e   :  { %1274 = vmatpush1.bf16.msra.mxu0 %v1751_v34  ;;  %1356 = vmatpush1.bf16.msra.mxu1 %v1754_v35 }
 0x15f   :  { %1275 = vmatprep.subr.bf16.mxu0 %v1759_v36  ;;  %1357 = vmatprep.subr.bf16.mxu1 %v1762_v37 }
 0x162   :  { %1276 = vmatpush1.bf16.msra.mxu0 %v1757_v38  ;;  %1358 = vmatpush1.bf16.msra.mxu1 %v1760_v39 }
 0x163   :  { %1277 = vmatprep.subr.bf16.mxu0 %v1765_v40  ;;  %1359 = vmatprep.subr.bf16.mxu1 %v1768_v41 }
 0x166   :  { %1278 = vmatpush1.bf16.msra.mxu0 %v1763_v42  ;;  %1360 = vmatpush1.bf16.msra.mxu1 %v1766_v44 }
 0x167   :  { %1279 = vmatprep.subr.bf16.mxu0 %v1771_v45  ;;  %1361 = vmatprep.subr.bf16.mxu1 %v1774_v46 }
 0x16a   :  { %1280 = vmatpush1.bf16.msra.mxu0 %v1769_v47  ;;  %1362 = vmatpush1.bf16.msra.mxu1 %v1772_v48 }
 0x16b   :  { %1281 = vmatprep.subr.bf16.mxu0 %v1777_v49  ;;  %1363 = vmatprep.subr.bf16.mxu1 %v1780_v50 }
 0x16e   :  { %1282 = vmatpush1.bf16.msra.mxu0 %v1775_v51  ;;  %1364 = vmatpush1.bf16.msra.mxu1 %v1778_v52 }
 0x171   :  { %1284 = vmatmul.mubr.bf16.vlgmr.msra.gmra.mrb[4].mxu0 %v417_v54  ;;  %1366 = vmatmul.mubr.bf16.vlgmr.msra.gmra.mrb[4].mxu1 %v417_v54 }
 0x244   :  { %v1285_v60 = vpop.f32.mrb[4].mxu0  ;;  %v1367_v61 = vpop.f32.mrb[4].mxu1 }
 0x245   :  { %v1564_v62 = vadd.f32 %v1285_v60, %v553_v56  ;;  %v1566_v0 = vadd.f32 %v1367_v61, %v561_v57  ;;  %v1287_v1 = vpop.f32.mrb[5].mxu0  ;;  %v1369_v2 = vpop.f32.mrb[5].mxu1 }
 0x246   :  { %v1565_v3 = vadd.f32 %v1287_v1, %v557_v43  ;;  %v1567_v5 = vadd.f32 %v1369_v2, %v565_v59  ;;  %v1289_v6 = vpop.f32.mrb[6].mxu0  ;;  %v1371_v7 = vpop.f32.mrb[6].mxu1 }
 0x247   :  { %v1374_v8 = vmax.f32 %v1564_v62, 0.0  ;;  %v1290_v9 = vpop.f32.mrb[7].mxu0  ;;  %v1372_v10 = vpop.f32.mrb[7].mxu1  ;;  %v1376_v11 = vmax.f32 %v1566_v0, 0.0 }
 0x248   :  { %v1375_v13 = vmax.f32 %v1565_v3, 0.0  ;;  %v1377_v16 = vmax.f32 %v1567_v5, 0.0 }
 0x249   :  { %v1401_v14 = vmul.f32 %v1384_v63, %v1374_v8  ;;  %v1403_v17 = vmul.f32 %v1392_v12, %v1376_v11 }
 0x24a   :  { %v1402_v15 = vmul.f32 %v1388_v4, %v1375_v13  ;;  %v1404_v19 = vmul.f32 %v1396_v27, %v1377_v16 }
 0x24c   :  { %v1405_v18 = vadd.f32 %v1402_v15, %v1401_v14 }
 0x24e   :  { %v1406_v20 = vadd.f32 %v1405_v18, %v1403_v17 }
 0x250   :  { %v1407_v29 = vadd.f32 %v1406_v20, %v1404_v19 }
 0x252   :  { %1408 = vadd.xlane.f32.xlu0 %v1407_v29 }
 0x2df   :  { %v1409_v22 = vpop.xlane.xlu0 %1408 }
 0x2e0   :  { %v1412_v23 = vadd.f32 %v1411_v21, %v1409_v22 }
 0x2e2   :  { %1414 = vst.msk [vmem:[%s2015_s6] sm:$0xff] %vm1413_vm2, %v1412_v23 }
 0x2e3   :  { %1419 = vsyncpa [#allocation4], 1 }
 0x2e4   :  { %1420 = vsyncpa [#allocation6], 1 }
 0x2e5   :  { %1421 = vsyncpa [#allocation9], 1 }

</bundles_post_ra>
